<compile_context>
chip_gen: v7x
topology: tpu7x:2x2x1
jax: 0.10.0
libtpu: 0.0.40
codegen_flags: <defaults>
</compile_context>

<pallas_src>
import functools

import jax
import jax.numpy as jnp
from jax import lax
from jax.experimental import pallas as pl
from jax.experimental.pallas import tpu as pltpu


def _round_up(x: int, m: int) -> int:
    return ((x + m - 1) // m) * m


# torch.nn.Linear contraction: x (M, K) with weight (N, K), contract K with K.
_TORCH_LINEAR_DNUMS = (((1,), (1,)), ((), ()))


def _linear_single_block_kernel(x_ref, w_ref, b_ref, o_ref):
    """One-tile fast path: whole problem in VMEM, bias added inline, no grid/K loop."""
    acc = lax.dot_general(x_ref[...], w_ref[...], _TORCH_LINEAR_DNUMS,
                          preferred_element_type=jnp.float32)
    o_ref[...] = (acc + b_ref[...].astype(jnp.float32)).astype(o_ref.dtype)


def _linear_tiled_f32_kernel(x_ref, w_ref, b_ref, o_ref):
    """Tiled path, f32 output: accumulate directly into the resident output block."""
    k = pl.program_id(2)
    partial = lax.dot_general(x_ref[...], w_ref[...], _TORCH_LINEAR_DNUMS,
                              preferred_element_type=jnp.float32)

    @pl.when(k == 0)
    def _first():
        # Bias folded into the first write: no extra RMW pass over the output tile.
        o_ref[...] = partial + b_ref[...].astype(jnp.float32)

    @pl.when(k > 0)
    def _rest():
        o_ref[...] += partial


def _linear_tiled_acc_kernel(x_ref, w_ref, b_ref, o_ref, acc_ref):
    """Tiled path, narrow output dtype: f32 VMEM accumulator, single final cast."""
    k = pl.program_id(2)

    @pl.when(k == 0)
    def _init():
        acc_ref[...] = jnp.zeros_like(acc_ref)

    acc_ref[...] += lax.dot_general(x_ref[...], w_ref[...], _TORCH_LINEAR_DNUMS,
                                    preferred_element_type=jnp.float32)

    @pl.when(k == pl.num_programs(2) - 1)
    def _finalize():
        o_ref[...] = (acc_ref[...] + b_ref[...].astype(jnp.float32)).astype(o_ref.dtype)


@functools.partial(jax.jit, static_argnames=("tm", "tn", "tk"))
def linear_pallas(x, weight, bias, *, tm=512, tn=512, tk=1024):
    """torch.nn.Linear semantics: y = x @ weight.T + bias.

    x: (B, IN), weight: (OUT, IN)  [torch layout, NOT transposed], bias: (OUT,) -> (B, OUT)
    """
    B, IN = x.shape
    OUT, IN_w = weight.shape
    assert IN == IN_w, "weight shape must be (OUT, IN)"
    out_dtype = x.dtype

    # Minimal lane/sublane-aligned dims.
    Mp = _round_up(B, 8)
    Kp = _round_up(IN, 128)
    Np = _round_up(OUT, 128)

    single_block = (Mp <= tm) and (Np <= tn) and (Kp <= tk)

    if single_block:
        tm_, tn_, tk_ = Mp, Np, Kp
    else:
        tm_ = min(tm, Mp)
        tn_ = min(tn, Np)
        tk_ = min(tk, Kp)
        Mp = _round_up(Mp, tm_)
        Np = _round_up(Np, tn_)
        Kp = _round_up(Kp, tk_)

    # Pad only when needed; zero padding is exact for a linear layer.
    x_p = x if (Mp == B and Kp == IN) else (
        jnp.zeros((Mp, Kp), x.dtype).at[:B, :IN].set(x))
    w_p = weight if (Np == OUT and Kp == IN) else (
        jnp.zeros((Np, Kp), weight.dtype).at[:OUT, :IN].set(weight))
    b_p = bias.reshape(1, OUT) if Np == OUT else (
        jnp.zeros((1, Np), bias.dtype).at[0, :OUT].set(bias))

    if single_block:
        # Grid-less call: whole (padded) operands are the blocks, everything in VMEM.
        y_p = pl.pallas_call(
            _linear_single_block_kernel,
            out_shape=jax.ShapeDtypeStruct((Mp, Np), out_dtype),
            in_specs=[
                pl.BlockSpec(memory_space=pltpu.MemorySpace.VMEM),
                pl.BlockSpec(memory_space=pltpu.MemorySpace.VMEM),
                pl.BlockSpec(memory_space=pltpu.MemorySpace.VMEM),
            ],
            out_specs=pl.BlockSpec(memory_space=pltpu.MemorySpace.VMEM),
            compiler_params=pltpu.CompilerParams(vmem_limit_bytes=48 << 20),
        )(x_p, w_p, b_p)
    else:
        grid = (Mp // tm_, Np // tn_, Kp // tk_)
        in_specs = [
            pl.BlockSpec((tm_, tk_), lambda i, j, k: (i, k)),   # x tile
            pl.BlockSpec((tn_, tk_), lambda i, j, k: (j, k)),   # weight tile (torch layout)
            pl.BlockSpec((1, tn_), lambda i, j, k: (0, j)),     # bias tile
        ]
        out_spec = pl.BlockSpec((tm_, tn_), lambda i, j, k: (i, j))
        compiler_params = pltpu.CompilerParams(
            dimension_semantics=("parallel", "parallel", "arbitrary"),
            vmem_limit_bytes=48 << 20)

        if out_dtype == jnp.float32:
            # Accumulate directly into the resident output block (no scratch).
            y_p = pl.pallas_call(
                _linear_tiled_f32_kernel,
                out_shape=jax.ShapeDtypeStruct((Mp, Np), out_dtype),
                grid=grid,
                in_specs=in_specs,
                out_specs=out_spec,
                compiler_params=compiler_params,
            )(x_p, w_p, b_p)
        else:
            y_p = pl.pallas_call(
                _linear_tiled_acc_kernel,
                out_shape=jax.ShapeDtypeStruct((Mp, Np), out_dtype),
                grid=grid,
                in_specs=in_specs,
                out_specs=out_spec,
                scratch_shapes=[pltpu.VMEM((tm_, tn_), jnp.float32)],
                compiler_params=compiler_params,
            )(x_p, w_p, b_p)

    if Mp == B and Np == OUT:
        return y_p
    return y_p[:B, :OUT]


if __name__ == "__main__":
    key = jax.random.PRNGKey(0)
    kx, kw, kb = jax.random.split(key, 3)

    B, IN, OUT = 8, 4, 4  # matches nn.Linear(4, 4)

    x = jax.random.normal(kx, (B, IN), dtype=jnp.float32)
    # Deterministic param init (nn.Linear layouts: W (OUT, IN), b (OUT,))
    bound = 1.0 / (IN ** 0.5)
    weight = jax.random.uniform(kw, (OUT, IN), dtype=jnp.float32,
                                minval=-bound, maxval=bound)
    bias = jax.random.uniform(kb, (OUT,), dtype=jnp.float32,
                              minval=-bound, maxval=bound)

    y = linear_pallas(x, weight, bias)
    jax.block_until_ready(y)

    # Reference check
    y_ref = x @ weight.T + bias
    assert jnp.allclose(y, y_ref, atol=1e-5), "mismatch vs reference"

    print("KERNEL_OK")
</pallas_src>

<mosaic_0001>
module attributes {stable_mosaic.version = 11 : i64} {
  func.func @_linear_single_block_kernel(%arg0: memref<8x128xf32, #tpu.memory_space<vmem>>, %arg1: memref<128x128xf32, #tpu.memory_space<vmem>>, %arg2: memref<1x128xf32, #tpu.memory_space<vmem>>, %arg3: memref<8x128xf32, #tpu.memory_space<vmem>>) attributes {dimension_semantics = [], scalar_prefetch = 0 : i64, scratch_operands = 0 : i64, tpu.core_type = #tpu.core_type<tc>} {
    %c0 = arith.constant 0 : index
    %c0_0 = arith.constant 0 : index
    %0 = vector.load %arg0[%c0, %c0_0] : memref<8x128xf32, #tpu.memory_space<vmem>>, vector<8x128xf32>
    %c0_1 = arith.constant 0 : index
    %c0_2 = arith.constant 0 : index
    %1 = vector.load %arg1[%c0_1, %c0_2] : memref<128x128xf32, #tpu.memory_space<vmem>>, vector<128x128xf32>
    %cst = arith.constant dense<0.000000e+00> : vector<8x128xf32>
    %2 = tpu.matmul %0, %1, %cst {dimension_numbers = #tpu.dot_dimension_numbers<[1], [1], [0], [0], [0, 0, 1, 0], [], []>} : vector<8x128xf32>, vector<128x128xf32>, vector<8x128xf32> -> vector<8x128xf32>
    %c0_3 = arith.constant 0 : index
    %c0_4 = arith.constant 0 : index
    %3 = vector.load %arg2[%c0_3, %c0_4] : memref<1x128xf32, #tpu.memory_space<vmem>>, vector<1x128xf32>
    %4 = vector.broadcast %3 : vector<1x128xf32> to vector<8x128xf32>
    %5 = arith.addf %2, %4 : vector<8x128xf32>
    %c0_5 = arith.constant 0 : index
    %c0_6 = arith.constant 0 : index
    %6 = vector.load %arg3[%c0_5, %c0_6] : memref<8x128xf32, #tpu.memory_space<vmem>>, vector<8x128xf32>
    tpu.vector_store %arg3[%c0_5, %c0_6], %5 {strides = array<i32>} : memref<8x128xf32, #tpu.memory_space<vmem>>, vector<8x128xf32>,
    return
  }
}

</mosaic_0001>

<bundles_post_ra>
// kernel: linear_pallas.1
= control target key start
LH: loop header
LB: loop body
LE: loop exit
PB: predicated region body
PF: predicated region fallthrough
CT: control target
= control target key end

     0   :  { %v193_v0 = vmov 0.0|0.0   ;;  %vm194_vm0 = vmmov 0   ;;  %v195_v3 = vmov 0.0   ;;  %s273_s1 = inlined_call_operand.vmem [shape: f32[128,128], index: 1, kind: input, shape index: {}]   ;;  %s274_s0 = inlined_call_operand.vmem [shape: f32[8,128], index: 0, kind: input, shape index: {}]   ;;  %s275_s2 = inlined_call_operand.vmem [shape: f32[1,128], index: 2, kind: input, shape index: {}]   ;;  %s276_s3 = inlined_call_operand.vmem [shape: f32[8,128], index: 3, kind: output, shape index: {}]  }
   0x1   :  { %166 = vmatprep.subr.bf16.mxu0 %v193_v0  ;;  %v15_v1 = vld [vmem:[%s273_s1] sm:$0xff]  ;;  %v16_v2 = vld [vmem:[%s273_s1 + $0x8] sm:$0xff]  ;;  %163 = vmatprep.mubr.msk.f32.mxu0 %vm194_vm0, %v195_v3  ;;  %v17_v5 = vld [vmem:[%s273_s1 + $0x10] sm:$0xff] }
   0x2   :  { %v167_v4 = vpack.c.bf16 %v16_v2, %v15_v1  ;;  %v18_v6 = vld [vmem:[%s273_s1 + $0x18] sm:$0xff]  ;;  %v19_v8 = vld [vmem:[%s273_s1 + $0x20] sm:$0xff]  ;;  %v20_v9 = vld [vmem:[%s273_s1 + $0x28] sm:$0xff] }
   0x3   :  { %v170_v7 = vpack.c.bf16 %v18_v6, %v17_v5  ;;  %v173_v10 = vpack.c.bf16 %v20_v9, %v19_v8  ;;  %v21_v11 = vld [vmem:[%s273_s1 + $0x30] sm:$0xff]  ;;  %v22_v12 = vld [vmem:[%s273_s1 + $0x38] sm:$0xff]  ;;  %v23_v14 = vld [vmem:[%s273_s1 + $0x40] sm:$0xff] }
   0x4   :  { %168 = vmatpush3.bf16.xpose.msra.mxu0 %v167_v4  ;;  %v176_v13 = vpack.c.bf16 %v22_v12, %v21_v11  ;;  %v24_v15 = vld [vmem:[%s273_s1 + $0x48] sm:$0xff]  ;;  %v25_v17 = vld [vmem:[%s273_s1 + $0x50] sm:$0xff]  ;;  %v26_v18 = vld [vmem:[%s273_s1 + $0x58] sm:$0xff] }
   0x5   :  { %169 = vmatprep.subr.bf16.mxu0 %v193_v0  ;;  %v179_v16 = vpack.c.bf16 %v24_v15, %v23_v14  ;;  %v182_v19 = vpack.c.bf16 %v26_v18, %v25_v17  ;;  %v27_v20 = vld [vmem:[%s273_s1 + $0x60] sm:$0xff]  ;;  %v28_v21 = vld [vmem:[%s273_s1 + $0x68] sm:$0xff]  ;;  %v29_v23 = vld [vmem:[%s273_s1 + $0x70] sm:$0xff] }
   0x6   :  { %v185_v22 = vpack.c.bf16 %v28_v21, %v27_v20  ;;  %v30_v24 = vld [vmem:[%s273_s1 + $0x78] sm:$0xff]  ;;  %v14_v26 = vld [vmem:[%s274_s0] sm:$0xff] }
   0x7   :  { %v188_v25 = vpack.c.bf16 %v30_v24, %v29_v23  ;;  %v113_v27 = vld [vmem:[%s275_s2] ss:$0 sm:$0xff] }
   0xc   :  { %171 = vmatpush3.bf16.xpose.msra.mxu0 %v170_v7 }
   0xd   :  { %172 = vmatprep.subr.bf16.mxu0 %v193_v0 }
  0x14   :  { %174 = vmatpush3.bf16.xpose.msra.mxu0 %v173_v10 }
  0x15   :  { %175 = vmatprep.subr.bf16.mxu0 %v193_v0 }
  0x1c   :  { %177 = vmatpush3.bf16.xpose.msra.mxu0 %v176_v13 }
  0x1d   :  { %178 = vmatprep.subr.bf16.mxu0 %v193_v0 }
  0x24   :  { %180 = vmatpush3.bf16.xpose.msra.mxu0 %v179_v16 }
  0x25   :  { %181 = vmatprep.subr.bf16.mxu0 %v193_v0 }
  0x2c   :  { %183 = vmatpush3.bf16.xpose.msra.mxu0 %v182_v19 }
  0x2d   :  { %184 = vmatprep.subr.bf16.mxu0 %v193_v0 }
  0x34   :  { %186 = vmatpush3.bf16.xpose.msra.mxu0 %v185_v22 }
  0x35   :  { %187 = vmatprep.subr.bf16.mxu0 %v193_v0 }
  0x3c   :  { %189 = vmatpush3.bf16.xpose.msra.mxu0 %v188_v25 }
  0x43   :  { %164 = vmatmul.mubr.f32.vlgmr.msra.gmra.mrb[0].mxu0 %v14_v26 }
 0x116   :  { %v104_v28 = vpop.f32.mrb[0].mxu0 }
 0x117   :  { %v105_v29 = vadd.f32 %v113_v27, %v104_v28  ;;  %v165_v30 = vpop.f32.mrb[1].mxu0 }
 0x119   :  { %108 = vst [vmem:[%s276_s3] sm:$0xff] %v105_v29 }

</bundles_post_ra>
